<compile_context>
chip_gen: v5e
topology: v5e:2x2
jax: 0.10.0
libtpu: 0.0.40
codegen_flags: <defaults>
</compile_context>

<pallas_src>
import jax
import jax.numpy as jnp
from jax import lax
from jax.experimental import pallas as pl
from jax.experimental.pallas import tpu as pltpu


def _round_up(x: int, m: int) -> int:
    return (x + m - 1) // m * m


def _choose_tiles(n: int, d: int):
    """Pick (row tile, column tile) sizes for the N x N distance matrix."""
    if n <= 128:
        t = _round_up(max(n, 8), 8)
        return t, t
    # >= 2 row tiles so the "parallel" row axis can shard across TensorCores
    # (v7x megacore); larger row tiles once N is big enough to amortize them.
    t_i = 128 if n <= 512 else 256
    # Column tile: as wide as sensible (fewer grid steps, fewer h2 restreams)
    # without exceeding a conservative input/temporary VMEM budget (safe on
    # v7x's 64 MiB) and without padding beyond the minimal 128 alignment.
    n_col_pad = _round_up(n, 128)
    budget = 24 * 1024 * 1024
    t_j = 128
    for cand in (512, 384, 256):
        stream_bytes = 2 * 4 * (t_i + cand) * d      # double-buffered rows
        tmp_bytes = 8 * 4 * t_i * cand               # dist & friends
        if stream_bytes + tmp_bytes <= budget and _round_up(n, cand) == n_col_pad:
            t_j = cand
            break
    # TODO(synk): for very large D, add a K (D) grid axis with a VMEM gram
    # accumulator instead of streaming full-(T, D) row blocks.
    return t_i, t_j


def _make_tile_kernel(t_i: int, t_j: int):
    """Kernel over grid (i, j): one (t_i, t_j) tile of the N x N distances."""

    def kernel(h1_ref, h2_ref, sq1_ref, sq2_ref, rowsum_ref, colpart_ref):
        i = pl.program_id(0)          # row tile    ("parallel")
        j = pl.program_id(1)          # column tile ("arbitrary" / reduction)

        # Gram trick on the MXU.  Operands stay in their native dtype (bf16
        # inputs hit the bf16-native MXU path); accumulate in f32.
        gram = lax.dot_general(
            h1_ref[...], h2_ref[...],
            dimension_numbers=(((1,), (1,)), ((), ())),
            preferred_element_type=jnp.float32)                  # (t_i, t_j)
        d2 = (sq1_ref[...] + sq2_ref[...]) - 2.0 * gram
        dist = jnp.sqrt(jnp.maximum(d2, 0.0))

        # Row / column reductions on the MXU (keeps the XLU out of the loop).
        ones_col = jnp.ones((t_j, 1), jnp.float32)
        ones_row = jnp.ones((1, t_i), jnp.float32)
        row_contrib = lax.dot_general(
            dist, ones_col, (((1,), (0,)), ((), ())),
            preferred_element_type=jnp.float32)                  # (t_i, 1)
        col_contrib = lax.dot_general(
            ones_row, dist, (((1,), (0,)), ((), ())),
            preferred_element_type=jnp.float32)                  # (1, t_j)

        # l1 ingredient: row sums accumulated across the inner j sweep.
        @pl.when(j == 0)
        def _():
            rowsum_ref[...] = jnp.zeros_like(rowsum_ref)

        rowsum_ref[...] += row_contrib

        # l2 ingredient: per-row-tile column partial sums (lane dense).
        colpart_ref[:, pl.ds(j, 1), :] = col_contrib[None, :, :]

        # Tiles containing global-diagonal entries: remove the diagonal from
        # both sums so the outputs are pure negative-pair sums.  Gated so
        # interior tiles pay nothing.
        row_lo = i * t_i
        col_lo = j * t_j

        @pl.when(jnp.logical_and(row_lo < col_lo + t_j, col_lo < row_lo + t_i))
        def _():
            rg = row_lo + lax.broadcasted_iota(jnp.int32, (t_i, t_j), 0)
            cg = col_lo + lax.broadcasted_iota(jnp.int32, (t_i, t_j), 1)
            diag = jnp.where(rg == cg, dist, 0.0)
            rowsum_ref[...] -= jnp.sum(diag, axis=1, keepdims=True)
            colpart_ref[:, pl.ds(j, 1), :] -= (
                jnp.sum(diag, axis=0, keepdims=True)[None, :, :])

    return kernel


def triplet_loss_pallas(h1: jax.Array, h2: jax.Array, eps) -> jax.Array:
    """Forward of TripletLoss: 0.5 * (triplet(h1, h2) + triplet(h2, h1))."""
    assert h1.shape == h2.shape and h1.ndim == 2
    n, d = h1.shape
    assert n >= 2, "TripletLoss needs at least one negative per anchor (N >= 2)."

    t_i, t_j = _choose_tiles(n, d)
    n_pad_i = _round_up(n, t_i)
    n_pad_j = _round_up(n, t_j)
    nb_i, nb_j = n_pad_i // t_i, n_pad_j // t_j

    h1p = jnp.pad(h1, ((0, n_pad_i - n), (0, 0))) if n_pad_i != n else h1
    h2p = jnp.pad(h2, ((0, n_pad_j - n), (0, 0))) if n_pad_j != n else h2

    # Host-side squared norms (hoisted out of the kernel's inner loop).
    h1f = h1p.astype(jnp.float32)
    h2f = h2p.astype(jnp.float32)
    sq1 = jnp.sum(h1f * h1f, axis=1, keepdims=True)            # (n_pad_i, 1)
    sq2 = jnp.sum(h2f * h2f, axis=1)[None, :]                  # (1, n_pad_j)

    kernel = _make_tile_kernel(t_i=t_i, t_j=t_j)

    # VMEM budget: double-buffered input streams + outputs + dist temporaries,
    # with margin; capped at 64 MiB so it stays safe on v7x.
    itemsize = max(h1.dtype.itemsize, 2)
    in_bytes = 2 * ((t_i + t_j) * d * itemsize + (t_i + t_j) * 4)
    out_bytes = 2 * (t_i + nb_j * t_j) * 4
    tmp_bytes = 8 * t_i * t_j * 4
    vmem_limit = int(min(max(2 * (in_bytes + out_bytes + tmp_bytes),
                             16 * 1024 * 1024), 64 * 1024 * 1024))

    cost = pl.CostEstimate(
        flops=2 * n_pad_i * n_pad_j * (d + 2),
        transcendentals=n_pad_i * n_pad_j,
        bytes_accessed=(itemsize * (n_pad_i * d + nb_i * n_pad_j * d)
                        + 4 * (2 * n_pad_i + n_pad_j + nb_i * n_pad_j)),
    )

    rowsum, colpart = pl.pallas_call(
        kernel,
        grid=(nb_i, nb_j),
        in_specs=[
            pl.BlockSpec((t_i, d), lambda i, j: (i, 0)),        # h1 row block
            pl.BlockSpec((t_j, d), lambda i, j: (j, 0)),        # h2 column block
            pl.BlockSpec((t_i, 1), lambda i, j: (i, 0)),        # ||h1||^2 column
            pl.BlockSpec((1, t_j), lambda i, j: (0, j)),        # ||h2||^2 row
        ],
        out_specs=(
            pl.BlockSpec((t_i, 1), lambda i, j: (i, 0)),        # neg row sums
            pl.BlockSpec((1, nb_j, t_j), lambda i, j: (i, 0, 0)),  # col partials
        ),
        out_shape=(
            jax.ShapeDtypeStruct((n_pad_i, 1), jnp.float32),
            jax.ShapeDtypeStruct((nb_i, nb_j, t_j), jnp.float32),
        ),
        compiler_params=pltpu.CompilerParams(
            dimension_semantics=("parallel", "arbitrary"),
            vmem_limit_bytes=vmem_limit,
        ),
        cost_estimate=cost,
    )(h1p, h2p, sq1, sq2)

    # ---- O(N) / O(N*D) epilogue in plain JAX on the small kernel outputs ----
    row_sum = rowsum[:n, 0]                                     # (N,)  diag-free
    col_sum = jnp.sum(colpart, axis=0).reshape(n_pad_j)[:n]     # (N,)  diag-free

    # Padded rows/columns of h1/h2 are zero, so their contribution to every
    # real row/column is exactly sqrt(||h||^2); remove it analytically.
    pad_j = n_pad_j - n
    pad_i = n_pad_i - n
    if pad_j:
        row_sum = row_sum - pad_j * jnp.sqrt(sq1[:n, 0])
    if pad_i:
        col_sum = col_sum - pad_i * jnp.sqrt(sq2[0, :n])

    # Positive (diagonal) distances computed directly -> no cancellation.
    diff = h1.astype(jnp.float32) - h2.astype(jnp.float32)
    pos_d = jnp.sqrt(jnp.sum(diff * diff, axis=1))              # (N,)

    inv_neg = 1.0 / (n - 1)          # num_pos = 1, num_neg = N - 1 per row
    l1 = pos_d - row_sum * inv_neg + eps
    l2 = pos_d - col_sum * inv_neg + eps
    l1 = jnp.where(l1 > 0.0, l1, 0.0)
    l2 = jnp.where(l2 > 0.0, l2, 0.0)
    return 0.5 * (jnp.mean(l1) + jnp.mean(l2))


def _reference(h1, h2, eps):
    # Pure-JAX reference mirroring the PyTorch module.
    n = h1.shape[0]
    pos_mask = jnp.eye(n, dtype=jnp.float32)
    neg_mask = 1.0 - pos_mask

    def one_side(anchor, samples):
        d2 = jnp.sum((anchor[:, None, :] - samples[None, :, :]) ** 2, axis=-1)
        dist = jnp.sqrt(jnp.maximum(d2, 0.0))
        num_pos = jnp.sum(pos_mask, axis=1)
        num_neg = jnp.sum(neg_mask, axis=1)
        pos_dv = jnp.sum(pos_mask * dist, axis=1)
        neg_dv = jnp.sum(neg_mask * dist, axis=1)
        loss = pos_dv / num_pos - neg_dv / num_neg + eps
        return jnp.mean(jnp.where(loss > 0, loss, 0.0))

    return 0.5 * (one_side(h1, h2) + one_side(h2, h1))


if __name__ == "__main__":
    key = jax.random.PRNGKey(0)
    loss_fn = jax.jit(triplet_loss_pallas)

    def check(n, d, eps, near_duplicate=False):
        k1, k2 = jax.random.split(
            jax.random.fold_in(key, n * 1000 + d + int(near_duplicate)))
        h1 = jax.random.normal(k1, (n, d), dtype=jnp.float32)
        if near_duplicate:
            h2 = h1 + 1e-3 * jax.random.normal(k2, (n, d), dtype=jnp.float32)
        else:
            h2 = jax.random.normal(k2, (n, d), dtype=jnp.float32)
        out = loss_fn(h1, h2, eps)
        jax.block_until_ready(out)
        ref = _reference(h1, h2, eps)
        assert jnp.allclose(out, ref, atol=2e-4, rtol=2e-4), (n, d, float(out), float(ref))

    # Small shape implied by the module (node embeddings): N=8 nodes, D=32.
    check(8, 32, eps=0.5)
    # Padded single-tile path.
    check(13, 32, eps=0.5)
    # Multi-row-tile grid (parallel row axis, wide column tile).
    check(300, 64, eps=1.0)
    # Near-duplicate views (h1 ~= h2): exercises the in-kernel diagonal
    # removal (no catastrophic-cancellation residual).
    check(300, 64, eps=1.0, near_duplicate=True)
    print("KERNEL_OK")
</pallas_src>

<mosaic_0001>
module attributes {stable_mosaic.version = 11 : i64} {
  func.func @kernel(%arg0: i32, %arg1: i32, %arg2: memref<8x32xf32, #tpu.memory_space<vmem>>, %arg3: memref<8x32xf32, #tpu.memory_space<vmem>>, %arg4: memref<8x1xf32, #tpu.memory_space<vmem>>, %arg5: memref<1x8xf32, #tpu.memory_space<vmem>>, %arg6: memref<8x1xf32, #tpu.memory_space<vmem>>, %arg7: memref<1x1x8xf32, #tpu.memory_space<vmem>>) attributes {dimension_semantics = [#tpu.dimension_semantics<parallel>, #tpu.dimension_semantics<arbitrary>], iteration_bounds = array<i64: 1, 1>, scalar_prefetch = 0 : i64, scratch_operands = 0 : i64, tpu.core_type = #tpu.core_type<tc>, window_params = [{transform_indices = @transform_0, window_bounds = array<i64: 8, 32>}, {transform_indices = @transform_1, window_bounds = array<i64: 8, 32>}, {transform_indices = @transform_2, window_bounds = array<i64: 8, 1>}, {transform_indices = @transform_3, window_bounds = array<i64: 1, 8>}, {transform_indices = @transform_4, window_bounds = array<i64: 8, 1>}, {transform_indices = @transform_5, window_bounds = array<i64: 1, 1, 8>}]} {
    %c0 = arith.constant 0 : index
    %c0_0 = arith.constant 0 : index
    %0 = vector.load %arg2[%c0, %c0_0] : memref<8x32xf32, #tpu.memory_space<vmem>>, vector<8x32xf32>
    %c0_1 = arith.constant 0 : index
    %c0_2 = arith.constant 0 : index
    %1 = vector.load %arg3[%c0_1, %c0_2] : memref<8x32xf32, #tpu.memory_space<vmem>>, vector<8x32xf32>
    %cst = arith.constant dense<0.000000e+00> : vector<8x8xf32>
    %2 = tpu.matmul %0, %1, %cst {dimension_numbers = #tpu.dot_dimension_numbers<[1], [1], [0], [0], [0, 0, 1, 0], [], []>} : vector<8x32xf32>, vector<8x32xf32>, vector<8x8xf32> -> vector<8x8xf32>
    %c0_3 = arith.constant 0 : index
    %c0_4 = arith.constant 0 : index
    %3 = vector.load %arg4[%c0_3, %c0_4] : memref<8x1xf32, #tpu.memory_space<vmem>>, vector<8x1xf32>
    %c0_5 = arith.constant 0 : index
    %c0_6 = arith.constant 0 : index
    %4 = vector.load %arg5[%c0_5, %c0_6] : memref<1x8xf32, #tpu.memory_space<vmem>>, vector<1x8xf32>
    %5 = vector.broadcast %3 : vector<8x1xf32> to vector<8x8xf32>
    %6 = vector.broadcast %4 : vector<1x8xf32> to vector<8x8xf32>
    %7 = arith.addf %5, %6 : vector<8x8xf32>
    %cst_7 = arith.constant 2.000000e+00 : f32
    %8 = vector.broadcast %cst_7 : f32 to vector<8x8xf32>
    %9 = arith.mulf %8, %2 : vector<8x8xf32>
    %10 = arith.subf %7, %9 : vector<8x8xf32>
    %cst_8 = arith.constant 0.000000e+00 : f32
    %11 = vector.broadcast %cst_8 : f32 to vector<8x8xf32>
    %12 = arith.maximumf %10, %11 : vector<8x8xf32>
    %13 = math.sqrt %12 : vector<8x8xf32>
    %cst_9 = arith.constant 1.000000e+00 : f32
    %14 = vector.broadcast %cst_9 : f32 to vector<8x1xf32>
    %cst_10 = arith.constant 1.000000e+00 : f32
    %15 = vector.broadcast %cst_10 : f32 to vector<1x8xf32>
    %cst_11 = arith.constant dense<0.000000e+00> : vector<8x1xf32>
    %16 = tpu.matmul %13, %14, %cst_11 {dimension_numbers = #tpu.dot_dimension_numbers<[1], [0], [0], [1], [0, 0, 1, 1], [], []>} : vector<8x8xf32>, vector<8x1xf32>, vector<8x1xf32> -> vector<8x1xf32>
    %cst_12 = arith.constant dense<0.000000e+00> : vector<1x8xf32>
    %17 = tpu.matmul %15, %13, %cst_12 {dimension_numbers = #tpu.dot_dimension_numbers<[1], [0], [0], [1], [0, 0, 1, 1], [], []>} : vector<1x8xf32>, vector<8x8xf32>, vector<1x8xf32> -> vector<1x8xf32>
    %c0_i32 = arith.constant 0 : i32
    %18 = arith.cmpi eq, %arg1, %c0_i32 : i32
    %19 = arith.extui %18 : i1 to i32
    %c0_i32_13 = arith.constant 0 : i32
    %20 = arith.cmpi ne, %19, %c0_i32_13 : i32
    scf.if %20 {
      %cst_24 = arith.constant 0.000000e+00 : f32
      %36 = vector.broadcast %cst_24 : f32 to vector<8x1xf32>
      %c0_25 = arith.constant 0 : index
      %c0_26 = arith.constant 0 : index
      %37 = vector.load %arg6[%c0_25, %c0_26] : memref<8x1xf32, #tpu.memory_space<vmem>>, vector<8x1xf32>
      tpu.vector_store %arg6[%c0_25, %c0_26], %36 {strides = array<i32>} : memref<8x1xf32, #tpu.memory_space<vmem>>, vector<8x1xf32>,
    } else {
    }
    %c0_14 = arith.constant 0 : index
    %c0_15 = arith.constant 0 : index
    %21 = vector.load %arg6[%c0_14, %c0_15] : memref<8x1xf32, #tpu.memory_space<vmem>>, vector<8x1xf32>
    %22 = arith.addf %21, %16 : vector<8x1xf32>
    %c0_16 = arith.constant 0 : index
    %c0_17 = arith.constant 0 : index
    %23 = vector.load %arg6[%c0_16, %c0_17] : memref<8x1xf32, #tpu.memory_space<vmem>>, vector<8x1xf32>
    tpu.vector_store %arg6[%c0_16, %c0_17], %22 {strides = array<i32>} : memref<8x1xf32, #tpu.memory_space<vmem>>, vector<8x1xf32>,
    %24 = vector.shape_cast %17 : vector<1x8xf32> to vector<1x1x8xf32>
    %c0_18 = arith.constant 0 : index
    %25 = arith.index_cast %arg1 : i32 to index
    %c0_19 = arith.constant 0 : index
    %26 = vector.load %arg7[%c0_18, %25, %c0_19] : memref<1x1x8xf32, #tpu.memory_space<vmem>>, vector<1x1x8xf32>
    tpu.vector_store %arg7[%c0_18, %25, %c0_19], %24 {strides = array<i32>} : memref<1x1x8xf32, #tpu.memory_space<vmem>>, vector<1x1x8xf32>,
    %c8_i32 = arith.constant 8 : i32
    %27 = arith.muli %arg0, %c8_i32 : i32
    %c8_i32_20 = arith.constant 8 : i32
    %28 = arith.muli %arg1, %c8_i32_20 : i32
    %c8_i32_21 = arith.constant 8 : i32
    %29 = arith.addi %28, %c8_i32_21 : i32
    %30 = arith.cmpi slt, %27, %29 : i32
    %c8_i32_22 = arith.constant 8 : i32
    %31 = arith.addi %27, %c8_i32_22 : i32
    %32 = arith.cmpi slt, %28, %31 : i32
    %33 = arith.andi %30, %32 : i1
    %34 = arith.extui %33 : i1 to i32
    %c0_i32_23 = arith.constant 0 : i32
    %35 = arith.cmpi ne, %34, %c0_i32_23 : i32
    scf.if %35 {
      %36 = tpu.iota {dimensions = array<i32: 0>} : vector<8x8xi32>
      %37 = vector.broadcast %27 : i32 to vector<8x8xi32>
      %38 = arith.addi %37, %36 : vector<8x8xi32>
      %39 = tpu.iota {dimensions = array<i32: 1>} : vector<8x8xi32>
      %40 = vector.broadcast %28 : i32 to vector<8x8xi32>
      %41 = arith.addi %40, %39 : vector<8x8xi32>
      %42 = arith.cmpi eq, %38, %41 : vector<8x8xi32>
      %cst_24 = arith.constant 0.000000e+00 : f32
      %43 = vector.broadcast %cst_24 : f32 to vector<8x8xf32>
      %44 = arith.select %42, %13, %43 : vector<8x8xi1>, vector<8x8xf32>
      %c0_25 = arith.constant 0 : index
      %c0_26 = arith.constant 0 : index
      %45 = vector.load %arg6[%c0_25, %c0_26] : memref<8x1xf32, #tpu.memory_space<vmem>>, vector<8x1xf32>
      %cst_27 = arith.constant dense<0.000000e+00> : vector<8xf32>
      %46 = vector.multi_reduction <add>, %44, %cst_27 [1] : vector<8x8xf32> to vector<8xf32>
      %47 = vector.shape_cast %46 : vector<8xf32> to vector<8x1xf32>
      %48 = arith.subf %45, %47 : vector<8x1xf32>
      %c0_28 = arith.constant 0 : index
      %c0_29 = arith.constant 0 : index
      %49 = vector.load %arg6[%c0_28, %c0_29] : memref<8x1xf32, #tpu.memory_space<vmem>>, vector<8x1xf32>
      tpu.vector_store %arg6[%c0_28, %c0_29], %48 {strides = array<i32>} : memref<8x1xf32, #tpu.memory_space<vmem>>, vector<8x1xf32>,
      %c0_30 = arith.constant 0 : index
      %50 = arith.index_cast %arg1 : i32 to index
      %c0_31 = arith.constant 0 : index
      %51 = vector.load %arg7[%c0_30, %50, %c0_31] : memref<1x1x8xf32, #tpu.memory_space<vmem>>, vector<1x1x8xf32>
      %cst_32 = arith.constant dense<0.000000e+00> : vector<8xf32>
      %52 = vector.multi_reduction <add>, %44, %cst_32 [0] : vector<8x8xf32> to vector<8xf32>
      %53 = vector.shape_cast %52 : vector<8xf32> to vector<1x8xf32>
      %54 = vector.shape_cast %53 : vector<1x8xf32> to vector<1x1x8xf32>
      %55 = arith.subf %51, %54 : vector<1x1x8xf32>
      %c0_33 = arith.constant 0 : index
      %56 = arith.index_cast %arg1 : i32 to index
      %c0_34 = arith.constant 0 : index
      %57 = vector.load %arg7[%c0_33, %56, %c0_34] : memref<1x1x8xf32, #tpu.memory_space<vmem>>, vector<1x1x8xf32>
      tpu.vector_store %arg7[%c0_33, %56, %c0_34], %55 {strides = array<i32>} : memref<1x1x8xf32, #tpu.memory_space<vmem>>, vector<1x1x8xf32>,
    } else {
    }
    return
  }
  func.func @transform_0(%arg0: i32, %arg1: i32) -> (i32, i32) {
    %c0_i32 = arith.constant 0 : i32
    %c0_i32_0 = arith.constant 0 : i32
    return %arg0, %c0_i32 : i32, i32
  }
  func.func @transform_1(%arg0: i32, %arg1: i32) -> (i32, i32) {
    %c0_i32 = arith.constant 0 : i32
    %c0_i32_0 = arith.constant 0 : i32
    return %arg1, %c0_i32 : i32, i32
  }
  func.func @transform_2(%arg0: i32, %arg1: i32) -> (i32, i32) {
    %c0_i32 = arith.constant 0 : i32
    %c0_i32_0 = arith.constant 0 : i32
    return %arg0, %c0_i32 : i32, i32
  }
  func.func @transform_3(%arg0: i32, %arg1: i32) -> (i32, i32) {
    %c0_i32 = arith.constant 0 : i32
    %c0_i32_0 = arith.constant 0 : i32
    return %c0_i32, %arg1 : i32, i32
  }
  func.func @transform_4(%arg0: i32, %arg1: i32) -> (i32, i32) {
    %c0_i32 = arith.constant 0 : i32
    %c0_i32_0 = arith.constant 0 : i32
    return %arg0, %c0_i32 : i32, i32
  }
  func.func @transform_5(%arg0: i32, %arg1: i32) -> (i32, i32, i32) {
    %c0_i32 = arith.constant 0 : i32
    %c0_i32_0 = arith.constant 0 : i32
    %c0_i32_1 = arith.constant 0 : i32
    return %arg0, %c0_i32, %c0_i32_0 : i32, i32, i32
  }
}

</mosaic_0001>

<bundles_post_ra>
// kernel: triplet_loss_pallas.1
= control target key start
LH: loop header
LB: loop body
LE: loop exit
PB: predicated region body
PF: predicated region fallthrough
CT: control target
= control target key end

     0   :  { %vm21_vm0 = vcmask 261120   ;;  %v187_v1 = vmov 0   ;;  %v188_v4 = vmov 1.0   ;;  %v143_v15 = vlaneseq  ;;  %s259_s1 = inlined_call_operand.vmem [shape: f32[8,32], index: 1, kind: input, shape index: {}]   ;;  %s260_s0 = inlined_call_operand.vmem [shape: f32[8,32], index: 0, kind: input, shape index: {}]   ;;  %s261_s2 = inlined_call_operand.vmem [shape: f32[8,1], index: 2, kind: input, shape index: {}]   ;;  %s262_s3 = inlined_call_operand.vmem [shape: f32[1,8], index: 3, kind: input, shape index: {}]   ;;  %s263_s4 = inlined_call_operand.vmem [shape: f32[8,1], index: 4, kind: output, shape index: {0}]   ;;  %s264_s5 = inlined_call_operand.vmem [shape: f32[1,1,8], index: 5, kind: output, shape index: {1}]  }
   0x1   :  { %v20_v0 = vld [vmem:[%s259_s1] sm:$0xff]  ;;  %183 = vset.pattern.permute.xlu0 %v187_v1  ;;  %93 = vmatpush.msra.mxu1 %v188_v4  ;;  %vm74_vm2 = vcmask 64512   ;;  %vm125_vm5 = vcmask 7168   ;;  %v189_v27 = vmov 0.0   ;;  %vm131_vm6 = vcmask 57344  }
   0x2   :  { %v48_v2 = vld [vmem:[%s261_s2] sm:$0xff]  ;;  %176 = vmatpush.xpose.msk.msra.mxu0 %vm21_vm0, %v20_v0  ;;  %v144_v18 = vshrl.u32 %v143_v15, 7  ;;  %v148_v19 = vand.u32 127, %v143_v15  ;;  %126 = vst.msk [vmem:[%s263_s4] sm:$0xff] %vm125_vm5, %v189_v27 }
   0x3   :  { %v19_v3 = vld [vmem:[%s260_s0] sm:$0xff]  ;;  %52 = vperm.xlu0 %183, %v48_v2  }
   0x4   :  { %v184_v5 = vld [vmem:[%s262_s3] ss:$0 sm:$0xff]  ;;  %vm151_vm3 = vcmp.eq.s32.totalorder %v144_v18, %v148_v19 }
   0x5   :  { %177 = vmatmul.msk.f32.vlgmr.msra.gmra.mxu0 %vm21_vm0, %v19_v3 }
   0x9   :  { %v127_v30 = vld [vmem:[%s263_s4] sm:$0xff] }
  0x75   :  { %v53_v6 = vpop.permute.xlu0 %52 }
  0x76   :  { %v58_v7 = vadd.f32 %v184_v5, %v53_v6 }
  0x82   :  { %v45_v8 = vpop.f32.mrf.mxu0 }
  0x83   :  { %v59_v9 = vmul.f32 2.0, %v45_v8 }
  0x85   :  { %v60_v10 = vsub.f32 %v58_v7, %v59_v9 }
  0x87   :  { %v61_v11 = vmax.f32 %v60_v10, 0.0 }
  0x89   :  { %185 = vrsqrt.f32 %v61_v11  ;;  %vm69_vm1 = vcmp.eq.f32.partialorder %v61_v11, inf  ;;  %v72_v22 = vand.u32 2147483648, %v61_v11  ;;  %vm71_vm4 = vcmp.eq.f32.partialorder %v61_v11, 0.0 }
  0x8f   :  { %v186_v12 = vpop.eup %185 }
  0x90   :  { %v63_v13 = vmul.f32 %v186_v12, %v61_v11 }
  0x92   :  { %v64_v14 = vmul.f32 %v186_v12, %v63_v13 }
  0x94   :  { %v65_v16 = vmul.f32 0.5, %v64_v14 }
  0x96   :  { %v66_v17 = vsub.f32 1.5, %v65_v16 }
  0x98   :  { %v67_v20 = vmul.f32 %v186_v12, %v66_v17 }
  0x9a   :  { %v68_v21 = vmul.f32 %v67_v20, %v61_v11 }
  0x9c   :  { %v70_v23 = vsel %vm69_vm1, %v61_v11, %v68_v21 }
  0x9d   :  { %v73_v24 = vsel %vm71_vm4, %v72_v22, %v70_v23 }
  0x9e   :  { %178 = vmatmul.msk.f32.vlgmr.msra.gmra.mxu1 %vm74_vm2, %v73_v24  ;;  %116 = vmatpush.msra.mxu2 %v73_v24  ;;  %v152_v25 = vsel %vm151_vm3, %v73_v24, 0.0 }
  0x9f   :  { %179 = vmatmul.msk.f32.vlgmr.msra.gmra.mxu2 %vm74_vm2, %v188_v4  ;;  %v154_v26 = vsel %vm74_vm2, %v152_v25, 0.0 }
  0xa0   :  { %155 = vadd.xlane.f32.xlu0 %v154_v26  ;;  %v160_v28 = vrot.slane %v154_v26, 4 }
  0xa2   :  { %v161_v29 = vadd.f32 %v160_v28, %v154_v26 }
  0xa4   :  { %v162_v33 = vrot.slane %v161_v29, 2 }
  0xa6   :  { %v163_v34 = vadd.f32 %v162_v33, %v161_v29 }
  0xa8   :  { %v164_v36 = vrot.slane %v163_v34, 1 }
  0xaa   :  { %v165_v40 = vadd.f32 %v164_v36, %v163_v34 }
 0x113   :  { %v156_v37 = vpop.xlane.xlu0 %155 }
 0x11b   :  { %v95_v31 = vpop.f32.mrf.mxu1 }
 0x11c   :  { %v128_v32 = vadd.f32 %v127_v30, %v95_v31 }
 0x11e   :  { %130 = vst.msk [vmem:[%s263_s4] sm:$0xff] %vm125_vm5, %v128_v32 }
 0x122   :  { %v118_v35 = vpop.f32.mrf.mxu2 }
 0x123   :  { %132 = vst.msk [vmem:[%s264_s5] sm:$0x1] %vm131_vm6, %v118_v35 }
 0x125   :  { %v153_v38 = vld [vmem:[%s263_s4] sm:$0xff] }
 0x126   :  { %v157_v39 = vsub.f32 %v153_v38, %v156_v37 }
 0x128   :  { %158 = vst.msk [vmem:[%s263_s4] sm:$0xff] %vm125_vm5, %v157_v39 }
 0x12a   :  { %v159_v41 = vld [vmem:[%s264_s5] sm:$0x1] }
 0x12b   :  { %v166_v42 = vsub.f32 %v159_v41, %v165_v40 }
 0x12d   :  { %167 = vst.msk [vmem:[%s264_s5] sm:$0x1] %vm131_vm6, %v166_v42 }

</bundles_post_ra>
